<compile_context>
chip_gen: v7x
topology: tpu7x:2x2x1
jax: 0.10.0
libtpu: 0.0.40
codegen_flags: <defaults>
</compile_context>

<pallas_src>
import jax
import jax.numpy as jnp
from jax.experimental import pallas as pl
from jax.experimental.pallas import tpu as pltpu

_LANE = 128
_SUBLANE = 8


def _round_up(n: int, m: int) -> int:
    return ((n + m - 1) // m) * m


def _make_mlp_kernel(num_layers, bias_offsets, bias_widths):
    """Kernel refs: x_ref, w_ref_0..w_ref_{L-1}, bias_ref, out_ref."""

    def kernel(*refs):
        x_ref = refs[0]
        w_refs = refs[1:1 + num_layers]
        b_ref = refs[1 + num_layers]
        out_ref = refs[2 + num_layers]

        h = x_ref[...]  # (TB, in_pad) bf16 for layer 0
        for i in range(num_layers):
            # bf16 operands into the MXU, f32 accumulation.
            acc = jnp.dot(h.astype(jnp.bfloat16), w_refs[i][...],
                          preferred_element_type=jnp.float32)
            b = b_ref[:, bias_offsets[i]:bias_offsets[i] + bias_widths[i]]  # (1, out_pad)
            h = jnp.maximum(acc + b, 0.0)  # bias + ReLU in f32
        out_ref[...] = h.astype(out_ref.dtype)

    return kernel


def fc_encoder_forward(x, weights, biases, *, tile_b: int = 512):
    """FCEncoder forward pass in one Pallas kernel.

    x:       (B, obs_shape) float32
    weights: list of (in_i, out_i) float32 arrays (transposed vs PyTorch (out, in))
    biases:  list of (out_i,)  float32 arrays
    Returns (B, hidden_size_list[-1]) float32.
    """
    num_layers = len(weights)
    B, obs = x.shape
    out_dim = weights[-1].shape[1]

    # Lane-dense padded feature widths.
    in_pads = [_round_up(w.shape[0], _LANE) for w in weights]
    out_pads = [_round_up(w.shape[1], _LANE) for w in weights]

    # Batch tile: multiple of 8 sublanes; cap so the grid has >= 2 steps when
    # the batch allows it (v7x: 2 TensorCores sharded via "parallel").
    tb_cap = _round_up(max(int(tile_b), _SUBLANE), _SUBLANE)
    two_step_tb = _round_up(max((B + 1) // 2, 1), _SUBLANE)
    tb = max(_SUBLANE, min(tb_cap, two_step_tb))
    b_pad = _round_up(B, tb)
    grid = (b_pad // tb,)

    # Zero-pad the input, stored as bf16 (the MXU operand dtype) -> halves the
    # dominant x HBM stream.  Exact: padded features hit zero weight rows.
    x_p = (jnp.zeros((b_pad, in_pads[0]), jnp.bfloat16)
           .at[:B, :obs].set(x.astype(jnp.bfloat16)))

    # Zero-pad weights and store as bf16.
    w_p = []
    for i, w in enumerate(weights):
        wp = jnp.zeros((in_pads[i], out_pads[i]), jnp.float32)
        wp = wp.at[:w.shape[0], :w.shape[1]].set(w)
        w_p.append(wp.astype(jnp.bfloat16))

    # One concatenated (1, sum_padded_out) f32 bias row; 128-aligned offsets.
    bias_offsets, bias_rows, off = [], [], 0
    for i, b in enumerate(biases):
        bias_offsets.append(off)
        bias_rows.append(jnp.zeros((out_pads[i],), jnp.float32).at[:b.shape[0]].set(b))
        off += out_pads[i]
    bias_cat = jnp.concatenate(bias_rows)[None, :]

    kernel = _make_mlp_kernel(num_layers, tuple(bias_offsets), tuple(out_pads))

    # Physical VMEM (v7x: 64 MiB, v5e/v6e: 128 MiB); leave 25% headroom.
    try:
        phys_vmem = int(pltpu.get_tpu_info().vmem_capacity_bytes)
    except Exception:
        phys_vmem = 64 << 20  # conservative (v7x)
    vmem_ceiling = int(phys_vmem * 0.75)

    def run(single_buffer_resident: bool):
        if single_buffer_resident:
            def resident_spec(shape):
                return pl.BlockSpec(shape, lambda i: (0, 0),
                                    pipeline_mode=pl.Buffered(1))
            resident_bufs = 1
        else:
            def resident_spec(shape):
                return pl.BlockSpec(shape, lambda i: (0, 0))
            resident_bufs = 2

        in_specs = [pl.BlockSpec((tb, in_pads[0]), lambda i: (i, 0))]
        for wp in w_p:
            in_specs.append(resident_spec(wp.shape))
        in_specs.append(resident_spec(bias_cat.shape))
        out_spec = pl.BlockSpec((tb, out_pads[-1]), lambda i: (i, 0))

        # Exact VMEM budget: double-buffered x/out tiles at their actual dtypes,
        # resident weights/bias, plus in-flight f32 activation temps.
        vmem_bytes = (2 * tb * in_pads[0] * 2              # bf16 x tiles
                      + 2 * tb * out_pads[-1] * 4          # f32 out tiles
                      + resident_bufs * sum(wp.size for wp in w_p) * 2
                      + resident_bufs * bias_cat.size * 4
                      + 2 * tb * max(out_pads) * 4)        # acc + activation temps
        vmem_limit = int(min(max(int(vmem_bytes * 1.25), 4 << 20), vmem_ceiling))

        return pl.pallas_call(
            kernel,
            out_shape=jax.ShapeDtypeStruct((b_pad, out_pads[-1]), jnp.float32),
            grid=grid,
            in_specs=in_specs,
            out_specs=out_spec,
            compiler_params=pltpu.CompilerParams(
                dimension_semantics=("parallel",),
                vmem_limit_bytes=vmem_limit,
            ),
        )(x_p, *w_p, bias_cat)

    try:
        out_p = run(True)
    except Exception:
        # Fallback: default double-buffered resident operands (tiny at these widths).
        out_p = run(False)

    # Strip batch and feature padding.
    return out_p[:B, :out_dim]


def _init_params(key, obs_shape, hidden_size_list):
    """Deterministic parameter init (uniform, PyTorch-Linear-style bounds)."""
    sizes = [obs_shape] + list(hidden_size_list)
    weights, biases = [], []
    for i in range(len(hidden_size_list)):
        fan_in, fan_out = sizes[i], sizes[i + 1]
        key, kw, kb = jax.random.split(key, 3)
        bound = 1.0 / (fan_in ** 0.5)
        # stored as (in, out): transpose of PyTorch's (out, in)
        w = jax.random.uniform(kw, (fan_in, fan_out), jnp.float32, -bound, bound)
        b = jax.random.uniform(kb, (fan_out,), jnp.float32, -bound, bound)
        weights.append(w)
        biases.append(b)
    return weights, biases


def _reference_forward(x, weights, biases):
    """Pure-JAX reference mirroring the kernel's bf16-operand / f32-accumulate math."""
    h = x
    for w, b in zip(weights, biases):
        acc = jnp.dot(h.astype(jnp.bfloat16), w.astype(jnp.bfloat16),
                      preferred_element_type=jnp.float32)
        h = jnp.maximum(acc + b, 0.0)
    return h


if __name__ == "__main__":
    key = jax.random.PRNGKey(0)

    # Small shapes consistent with FCEncoder(obs_shape, hidden_size_list).
    batch = 12
    obs_shape = 16
    hidden_size_list = [32, 64, 32]

    key, kx = jax.random.split(key)
    x = jax.random.normal(kx, (batch, obs_shape), dtype=jnp.float32)
    weights, biases = _init_params(key, obs_shape, hidden_size_list)

    ref = _reference_forward(x, weights, biases)

    # Default path: tile capped for >=2 grid steps (v7x dual-TC coverage).
    out = jax.block_until_ready(fc_encoder_forward(x, weights, biases))
    assert out.shape == (batch, hidden_size_list[-1])
    assert jnp.allclose(out, ref, atol=1e-3, rtol=1e-3), "default-tile mismatch vs JAX reference"

    # Explicit small-tile path (multi-step pipelined grid).
    out_tiled = jax.block_until_ready(fc_encoder_forward(x, weights, biases, tile_b=8))
    assert out_tiled.shape == (batch, hidden_size_list[-1])
    assert jnp.allclose(out_tiled, ref, atol=1e-3, rtol=1e-3), "tiled mismatch vs JAX reference"

    # Larger batch exercises a bigger tile + padded-batch rows.
    key, kx2 = jax.random.split(key)
    x2 = jax.random.normal(kx2, (300, obs_shape), dtype=jnp.float32)
    ref2 = _reference_forward(x2, weights, biases)
    out2 = jax.block_until_ready(fc_encoder_forward(x2, weights, biases))
    assert out2.shape == (300, hidden_size_list[-1])
    assert jnp.allclose(out2, ref2, atol=1e-3, rtol=1e-3), "large-batch mismatch vs JAX reference"

    print("KERNEL_OK")
</pallas_src>

<mosaic_0001>
module attributes {stable_mosaic.version = 11 : i64} {
  func.func @kernel(%arg0: i32, %arg1: memref<8x128xbf16, #tpu.memory_space<vmem>>, %arg2: memref<128x128xbf16, #tpu.memory_space<vmem>>, %arg3: memref<128x128xbf16, #tpu.memory_space<vmem>>, %arg4: memref<128x128xbf16, #tpu.memory_space<vmem>>, %arg5: memref<1x384xf32, #tpu.memory_space<vmem>>, %arg6: memref<8x128xf32, #tpu.memory_space<vmem>>) attributes {dimension_semantics = [#tpu.dimension_semantics<parallel>], iteration_bounds = array<i64: 2>, scalar_prefetch = 0 : i64, scratch_operands = 0 : i64, tpu.core_type = #tpu.core_type<tc>, window_params = [{transform_indices = @transform_0, window_bounds = array<i64: 8, 128>}, {pipeline_mode = #tpu.pipeline_mode<synchronous>, transform_indices = @transform_1, window_bounds = array<i64: 128, 128>}, {pipeline_mode = #tpu.pipeline_mode<synchronous>, transform_indices = @transform_2, window_bounds = array<i64: 128, 128>}, {pipeline_mode = #tpu.pipeline_mode<synchronous>, transform_indices = @transform_3, window_bounds = array<i64: 128, 128>}, {pipeline_mode = #tpu.pipeline_mode<synchronous>, transform_indices = @transform_4, window_bounds = array<i64: 1, 384>}, {transform_indices = @transform_5, window_bounds = array<i64: 8, 128>}]} {
    %c0 = arith.constant 0 : index
    %c0_0 = arith.constant 0 : index
    %0 = vector.load %arg1[%c0, %c0_0] : memref<8x128xbf16, #tpu.memory_space<vmem>>, vector<8x128xbf16>
    %c0_1 = arith.constant 0 : index
    %c0_2 = arith.constant 0 : index
    %1 = vector.load %arg2[%c0_1, %c0_2] : memref<128x128xbf16, #tpu.memory_space<vmem>>, vector<128x128xbf16>
    %cst = arith.constant dense<0.000000e+00> : vector<8x128xf32>
    %2 = tpu.matmul %0, %1, %cst {dimension_numbers = #tpu.dot_dimension_numbers<[1], [0], [0], [1], [0, 0, 1, 1], [], []>} : vector<8x128xbf16>, vector<128x128xbf16>, vector<8x128xf32> -> vector<8x128xf32>
    %c0_3 = arith.constant 0 : index
    %c0_4 = arith.constant 0 : index
    %3 = vector.load %arg5[%c0_3, %c0_4] : memref<1x384xf32, #tpu.memory_space<vmem>>, vector<1x128xf32>
    %4 = vector.broadcast %3 : vector<1x128xf32> to vector<8x128xf32>
    %5 = arith.addf %2, %4 : vector<8x128xf32>
    %cst_5 = arith.constant 0.000000e+00 : f32
    %6 = vector.broadcast %cst_5 : f32 to vector<8x128xf32>
    %7 = arith.maximumf %5, %6 : vector<8x128xf32>
    %8 = arith.truncf %7 : vector<8x128xf32> to vector<8x128xbf16>
    %c0_6 = arith.constant 0 : index
    %c0_7 = arith.constant 0 : index
    %9 = vector.load %arg3[%c0_6, %c0_7] : memref<128x128xbf16, #tpu.memory_space<vmem>>, vector<128x128xbf16>
    %cst_8 = arith.constant dense<0.000000e+00> : vector<8x128xf32>
    %10 = tpu.matmul %8, %9, %cst_8 {dimension_numbers = #tpu.dot_dimension_numbers<[1], [0], [0], [1], [0, 0, 1, 1], [], []>} : vector<8x128xbf16>, vector<128x128xbf16>, vector<8x128xf32> -> vector<8x128xf32>
    %c0_9 = arith.constant 0 : index
    %c128 = arith.constant 128 : index
    %11 = vector.load %arg5[%c0_9, %c128] : memref<1x384xf32, #tpu.memory_space<vmem>>, vector<1x128xf32>
    %12 = vector.broadcast %11 : vector<1x128xf32> to vector<8x128xf32>
    %13 = arith.addf %10, %12 : vector<8x128xf32>
    %cst_10 = arith.constant 0.000000e+00 : f32
    %14 = vector.broadcast %cst_10 : f32 to vector<8x128xf32>
    %15 = arith.maximumf %13, %14 : vector<8x128xf32>
    %16 = arith.truncf %15 : vector<8x128xf32> to vector<8x128xbf16>
    %c0_11 = arith.constant 0 : index
    %c0_12 = arith.constant 0 : index
    %17 = vector.load %arg4[%c0_11, %c0_12] : memref<128x128xbf16, #tpu.memory_space<vmem>>, vector<128x128xbf16>
    %cst_13 = arith.constant dense<0.000000e+00> : vector<8x128xf32>
    %18 = tpu.matmul %16, %17, %cst_13 {dimension_numbers = #tpu.dot_dimension_numbers<[1], [0], [0], [1], [0, 0, 1, 1], [], []>} : vector<8x128xbf16>, vector<128x128xbf16>, vector<8x128xf32> -> vector<8x128xf32>
    %c0_14 = arith.constant 0 : index
    %c256 = arith.constant 256 : index
    %19 = vector.load %arg5[%c0_14, %c256] : memref<1x384xf32, #tpu.memory_space<vmem>>, vector<1x128xf32>
    %20 = vector.broadcast %19 : vector<1x128xf32> to vector<8x128xf32>
    %21 = arith.addf %18, %20 : vector<8x128xf32>
    %cst_15 = arith.constant 0.000000e+00 : f32
    %22 = vector.broadcast %cst_15 : f32 to vector<8x128xf32>
    %23 = arith.maximumf %21, %22 : vector<8x128xf32>
    %c0_16 = arith.constant 0 : index
    %c0_17 = arith.constant 0 : index
    %24 = vector.load %arg6[%c0_16, %c0_17] : memref<8x128xf32, #tpu.memory_space<vmem>>, vector<8x128xf32>
    tpu.vector_store %arg6[%c0_16, %c0_17], %23 {strides = array<i32>} : memref<8x128xf32, #tpu.memory_space<vmem>>, vector<8x128xf32>,
    return
  }
  func.func @transform_0(%arg0: i32) -> (i32, i32) {
    %c0_i32 = arith.constant 0 : i32
    %c0_i32_0 = arith.constant 0 : i32
    return %arg0, %c0_i32 : i32, i32
  }
  func.func @transform_1(%arg0: i32) -> (i32, i32) {
    %c0_i32 = arith.constant 0 : i32
    %c0_i32_0 = arith.constant 0 : i32
    %c0_i32_1 = arith.constant 0 : i32
    return %c0_i32, %c0_i32_0 : i32, i32
  }
  func.func @transform_2(%arg0: i32) -> (i32, i32) {
    %c0_i32 = arith.constant 0 : i32
    %c0_i32_0 = arith.constant 0 : i32
    %c0_i32_1 = arith.constant 0 : i32
    return %c0_i32, %c0_i32_0 : i32, i32
  }
  func.func @transform_3(%arg0: i32) -> (i32, i32) {
    %c0_i32 = arith.constant 0 : i32
    %c0_i32_0 = arith.constant 0 : i32
    %c0_i32_1 = arith.constant 0 : i32
    return %c0_i32, %c0_i32_0 : i32, i32
  }
  func.func @transform_4(%arg0: i32) -> (i32, i32) {
    %c0_i32 = arith.constant 0 : i32
    %c0_i32_0 = arith.constant 0 : i32
    %c0_i32_1 = arith.constant 0 : i32
    return %c0_i32, %c0_i32_0 : i32, i32
  }
  func.func @transform_5(%arg0: i32) -> (i32, i32) {
    %c0_i32 = arith.constant 0 : i32
    %c0_i32_0 = arith.constant 0 : i32
    return %arg0, %c0_i32 : i32, i32
  }
}

module attributes {stable_mosaic.version = 11 : i64} {
  func.func @kernel(%arg0: i32, %arg1: memref<8x128xbf16, #tpu.memory_space<vmem>>, %arg2: memref<128x128xbf16, #tpu.memory_space<vmem>>, %arg3: memref<128x128xbf16, #tpu.memory_space<vmem>>, %arg4: memref<128x128xbf16, #tpu.memory_space<vmem>>, %arg5: memref<1x384xf32, #tpu.memory_space<vmem>>, %arg6: memref<8x128xf32, #tpu.memory_space<vmem>>) attributes {dimension_semantics = [#tpu.dimension_semantics<parallel>], iteration_bounds = array<i64: 2>, scalar_prefetch = 0 : i64, scratch_operands = 0 : i64, tpu.core_type = #tpu.core_type<tc>, window_params = [{transform_indices = @transform_0, window_bounds = array<i64: 8, 128>}, {pipeline_mode = #tpu.pipeline_mode<synchronous>, transform_indices = @transform_1, window_bounds = array<i64: 128, 128>}, {pipeline_mode = #tpu.pipeline_mode<synchronous>, transform_indices = @transform_2, window_bounds = array<i64: 128, 128>}, {pipeline_mode = #tpu.pipeline_mode<synchronous>, transform_indices = @transform_3, window_bounds = array<i64: 128, 128>}, {pipeline_mode = #tpu.pipeline_mode<synchronous>, transform_indices = @transform_4, window_bounds = array<i64: 1, 384>}, {transform_indices = @transform_5, window_bounds = array<i64: 8, 128>}]} {
    %c0 = arith.constant 0 : index
    %c0_0 = arith.constant 0 : index
    %0 = vector.load %arg1[%c0, %c0_0] : memref<8x128xbf16, #tpu.memory_space<vmem>>, vector<8x128xbf16>
    %c0_1 = arith.constant 0 : index
    %c0_2 = arith.constant 0 : index
    %1 = vector.load %arg2[%c0_1, %c0_2] : memref<128x128xbf16, #tpu.memory_space<vmem>>, vector<128x128xbf16>
    %cst = arith.constant dense<0.000000e+00> : vector<8x128xf32>
    %2 = tpu.matmul %0, %1, %cst {dimension_numbers = #tpu.dot_dimension_numbers<[1], [0], [0], [1], [0, 0, 1, 1], [], []>} : vector<8x128xbf16>, vector<128x128xbf16>, vector<8x128xf32> -> vector<8x128xf32>
    %c0_3 = arith.constant 0 : index
    %c0_4 = arith.constant 0 : index
    %3 = vector.load %arg5[%c0_3, %c0_4] : memref<1x384xf32, #tpu.memory_space<vmem>>, vector<1x128xf32>
    %4 = vector.broadcast %3 : vector<1x128xf32> to vector<8x128xf32>
    %5 = arith.addf %2, %4 : vector<8x128xf32>
    %cst_5 = arith.constant 0.000000e+00 : f32
    %6 = vector.broadcast %cst_5 : f32 to vector<8x128xf32>
    %7 = arith.maximumf %5, %6 : vector<8x128xf32>
    %8 = arith.truncf %7 : vector<8x128xf32> to vector<8x128xbf16>
    %c0_6 = arith.constant 0 : index
    %c0_7 = arith.constant 0 : index
    %9 = vector.load %arg3[%c0_6, %c0_7] : memref<128x128xbf16, #tpu.memory_space<vmem>>, vector<128x128xbf16>
    %cst_8 = arith.constant dense<0.000000e+00> : vector<8x128xf32>
    %10 = tpu.matmul %8, %9, %cst_8 {dimension_numbers = #tpu.dot_dimension_numbers<[1], [0], [0], [1], [0, 0, 1, 1], [], []>} : vector<8x128xbf16>, vector<128x128xbf16>, vector<8x128xf32> -> vector<8x128xf32>
    %c0_9 = arith.constant 0 : index
    %c128 = arith.constant 128 : index
    %11 = vector.load %arg5[%c0_9, %c128] : memref<1x384xf32, #tpu.memory_space<vmem>>, vector<1x128xf32>
    %12 = vector.broadcast %11 : vector<1x128xf32> to vector<8x128xf32>
    %13 = arith.addf %10, %12 : vector<8x128xf32>
    %cst_10 = arith.constant 0.000000e+00 : f32
    %14 = vector.broadcast %cst_10 : f32 to vector<8x128xf32>
    %15 = arith.maximumf %13, %14 : vector<8x128xf32>
    %16 = arith.truncf %15 : vector<8x128xf32> to vector<8x128xbf16>
    %c0_11 = arith.constant 0 : index
    %c0_12 = arith.constant 0 : index
    %17 = vector.load %arg4[%c0_11, %c0_12] : memref<128x128xbf16, #tpu.memory_space<vmem>>, vector<128x128xbf16>
    %cst_13 = arith.constant dense<0.000000e+00> : vector<8x128xf32>
    %18 = tpu.matmul %16, %17, %cst_13 {dimension_numbers = #tpu.dot_dimension_numbers<[1], [0], [0], [1], [0, 0, 1, 1], [], []>} : vector<8x128xbf16>, vector<128x128xbf16>, vector<8x128xf32> -> vector<8x128xf32>
    %c0_14 = arith.constant 0 : index
    %c256 = arith.constant 256 : index
    %19 = vector.load %arg5[%c0_14, %c256] : memref<1x384xf32, #tpu.memory_space<vmem>>, vector<1x128xf32>
    %20 = vector.broadcast %19 : vector<1x128xf32> to vector<8x128xf32>
    %21 = arith.addf %18, %20 : vector<8x128xf32>
    %cst_15 = arith.constant 0.000000e+00 : f32
    %22 = vector.broadcast %cst_15 : f32 to vector<8x128xf32>
    %23 = arith.maximumf %21, %22 : vector<8x128xf32>
    %c0_16 = arith.constant 0 : index
    %c0_17 = arith.constant 0 : index
    %24 = vector.load %arg6[%c0_16, %c0_17] : memref<8x128xf32, #tpu.memory_space<vmem>>, vector<8x128xf32>
    tpu.vector_store %arg6[%c0_16, %c0_17], %23 {strides = array<i32>} : memref<8x128xf32, #tpu.memory_space<vmem>>, vector<8x128xf32>,
    return
  }
  func.func @transform_0(%arg0: i32) -> (i32, i32) {
    %c0_i32 = arith.constant 0 : i32
    %c0_i32_0 = arith.constant 0 : i32
    return %arg0, %c0_i32 : i32, i32
  }
  func.func @transform_1(%arg0: i32) -> (i32, i32) {
    %c0_i32 = arith.constant 0 : i32
    %c0_i32_0 = arith.constant 0 : i32
    %c0_i32_1 = arith.constant 0 : i32
    return %c0_i32, %c0_i32_0 : i32, i32
  }
  func.func @transform_2(%arg0: i32) -> (i32, i32) {
    %c0_i32 = arith.constant 0 : i32
    %c0_i32_0 = arith.constant 0 : i32
    %c0_i32_1 = arith.constant 0 : i32
    return %c0_i32, %c0_i32_0 : i32, i32
  }
  func.func @transform_3(%arg0: i32) -> (i32, i32) {
    %c0_i32 = arith.constant 0 : i32
    %c0_i32_0 = arith.constant 0 : i32
    %c0_i32_1 = arith.constant 0 : i32
    return %c0_i32, %c0_i32_0 : i32, i32
  }
  func.func @transform_4(%arg0: i32) -> (i32, i32) {
    %c0_i32 = arith.constant 0 : i32
    %c0_i32_0 = arith.constant 0 : i32
    %c0_i32_1 = arith.constant 0 : i32
    return %c0_i32, %c0_i32_0 : i32, i32
  }
  func.func @transform_5(%arg0: i32) -> (i32, i32) {
    %c0_i32 = arith.constant 0 : i32
    %c0_i32_0 = arith.constant 0 : i32
    return %arg0, %c0_i32 : i32, i32
  }
}

</mosaic_0001>

<bundles_post_ra>
// kernel: tpu_custom_call.1
= control target key start
LH: loop header
LB: loop body
LE: loop exit
PB: predicated region body
PF: predicated region fallthrough
CT: control target
= control target key end

     0   :  { %10 = vsyncpa [#allocation3], 0  ;;  %s1510_s0 = inlined_call_operand.hbm [shape: bf16[16,128], index: 0, kind: input, shape index: {}]   ;;  %s1511_s1 = inlined_call_operand.hbm [shape: bf16[128,128], index: 1, kind: input, shape index: {}]   ;;  %s1512_s2 = inlined_call_operand.hbm [shape: bf16[128,128], index: 2, kind: input, shape index: {}]   ;;  %s1513_s3 = inlined_call_operand.hbm [shape: bf16[128,128], index: 3, kind: input, shape index: {}]   ;;  %s1514_s4 = inlined_call_operand.vmem [shape: f32[1,384], index: 4, kind: input, shape index: {}]   ;;  %s1515_s5 = inlined_call_operand.hbm [shape: f32[16,128], index: 5, kind: output, shape index: {}]  }
   0x1   :  { %12 = vsyncpa [#allocation3 + $0x1], 0 }
   0x2   :  { %13 = vsyncpa [#allocation6], 0 }
   0x3   :  { %14 = vsyncpa [#allocation9], 0 }
   0x4   :  { %15 = vsyncpa [#allocation4], 0 }
   0x5   :  { %17 = vsyncpa [#allocation4 + $0x1], 0  ;;  %s1204_s18 = smov 0   ;;  %s1206_s19 = smov 0  }
   0x6   :  { %s1208_s20 = smov 0   ;;  %s1210_s21 = smov 0  }
   0x7 LB: > { %s1225_s22 = sadd.s32 4294967295, %s1163_s21   ;;  %s738_s23 = sadd.s32 4294967294, %s1163_s21   ;;  %s1163_s21 = sphi %s1210_s21, %s1538_s21   ;;  %s1159_s20 = sphi %s1208_s20, %s1537_s20   ;;  %s1155_s19 = sphi %s1206_s19, %s1536_s19   ;;  %s1151_s18 = sphi %s1204_s18, %s1535_s18  }
   0x8   : > { %p43_p0 = scmp.ne.s32.totalorder %s1155_s19, %s1151_s18  ;;  %p1516_p1 = scmp.eq.s32.totalorder %s1225_s22, 0 }
   0x9   : > { %p157_p3 = scmp.eq.s32.totalorder %s738_s23, 1  ;;  %p739_p5 = scmp.ge.s32.totalorder %s1163_s21, 1 }
   0xa   : > { %p1234_p4 = por %p1516_p1, %p43_p0  ;;  %p164_p7 = scmp.lt.s32.totalorder %s1163_s21, 3 }
   0xb   : > { %p1239_p6 = por %p157_p3, %p43_p0  ;;  %s1165_s27 = smov [#allocation5]  }
   0xc   : > { %s1519_s24 = scalar_select %p1234_p4, 1, 0 }
   0xd   : > { %s1520_s25 = scalar_select %p1239_p6, 1, 0 }
   0xe   : > { %p1244_p8 = pnand %p739_p5, %p164_p7  ;;  %s176_s28 = sshll.u32 %s1165_s27, 4  ;;  %s1248_s28 = int_to_ptr.vmem [resolvable:$true] %s176_s28 }
   0xf   : > { %s1166_s30 = smov [#allocation7]   ;;  %s1167_s7 = smov [#allocation8]  }
  0x10   : > { %s1521_s26 = scalar_select %p1244_p8, 1, 0 }
  0x11   : > { %p886_p9 = pneg %p1244_p8  ;;  %s189_s6 = sshll.u32 %s1166_s30, 4  ;;  %s1259_s6 = int_to_ptr.vmem [resolvable:$true] %s189_s6 }
  0x12   : > { %s1261_s8 = sshll.u32 %s1167_s7, 4  ;;  %s975_s11 = scalar_lea.hbm %s1511_s1, 1024  ;;  %s203_s8 = int_to_ptr.vmem [resolvable:$true] %s1261_s8 }
  0x13   : > { %p1255_p11 = pnand %p886_p9, %p1516_p1  ;;  %p976_p12 = scmp.ne.s32.totalorder %s1511_s1, %s975_s11 }
  0x14   : > { %p982_p5 = scmp.lt.u32.totalorder %s975_s11, %s1511_s1 }
  0x15   : > { %p1271_p13 = pneg %p1255_p11 }
  0x17   : > { %p978_p0 = pnand %p1271_p13, %p976_p12 }
  0x19   : > { %p979_p3 = pneg %p978_p0 }
  0x1b   : > { %p984_p7 = pnand %p982_p5, %p979_p3 }
  0x1d   : > { %987 = shalt.err (!%p984_p7)
}
  0x1e   : > { %s988_s17 = scalar_lea.vmem %s1248_s28, 1024  ;;  %p996_p2 = scmp.lt.s32.totalorder %s1248_s28, %s1248_s28 }
  0x1f   : > { %p989_p9 = scmp.ne.s32.totalorder %s1248_s28, %s988_s17  ;;  %p997_p6 = scmp.lt.s32.totalorder %s988_s17, %s988_s17 }
  0x21   : > { %p991_p10 = pnand %p989_p9, %p1271_p13  ;;  %p998_p12 = por %p997_p6, %p996_p2 }
  0x23   : > { %p992_p1 = pneg %p991_p10 }
  0x25   : > { %p999_p0 = pnand %p998_p12, %p992_p1 }
  0x27   : > { %1002 = shalt.err (!%p999_p0)
}
  0x28   : > { %s1168_s23 = smov 64   ;;  %s1169_s27 = smov 4  }
  0x29   : > { %889 = dma.hbm_to_vmem [thread:$0]  (!%p1255_p11), %s1511_s1, 1024, %s1248_s28, [#allocation6], %s1168_s23, %s1168_s23, %s1169_s27  }
  0x2a   : > { %s1003_s11 = scalar_lea.hbm %s1512_s2, 1024 }
  0x2b   : > { %p1004_p1 = scmp.ne.s32.totalorder %s1512_s2, %s1003_s11  ;;  %p1010_p10 = scmp.lt.u32.totalorder %s1003_s11, %s1512_s2 }
  0x2d   : > { %p1006_p2 = pnand %p1004_p1, %p1271_p13 }
  0x2f   : > { %p1007_p6 = pneg %p1006_p2 }
  0x31   : > { %p1012_p3 = pnand %p1010_p10, %p1007_p6 }
  0x33   : > { %1015 = shalt.err (!%p1012_p3)
}
  0x34   : > { %s1016_s28 = scalar_lea.vmem %s1259_s6, 1024  ;;  %p1024_p12 = scmp.lt.s32.totalorder %s1259_s6, %s1259_s6 }
  0x35   : > { %p1017_p5 = scmp.ne.s32.totalorder %s1259_s6, %s1016_s28  ;;  %p1025_p0 = scmp.lt.s32.totalorder %s1016_s28, %s1016_s28 }
  0x37   : > { %p1019_p7 = pnand %p1017_p5, %p1271_p13  ;;  %p1026_p1 = por %p1025_p0, %p1024_p12 }
  0x39   : > { %p1020_p9 = pneg %p1019_p7 }
  0x3b   : > { %p1027_p2 = pnand %p1026_p1, %p1020_p9 }
  0x3d   : > { %1030 = shalt.err (!%p1027_p2)
}
  0x3e   : > { %892 = dma.hbm_to_vmem [thread:$0]  (!%p1255_p11), %s1512_s2, 1024, %s1259_s6, [#allocation6], %s1168_s23, %s1168_s23, %s1169_s27  }
  0x3f   : > { %s1031_s10 = scalar_lea.hbm %s1513_s3, 1024 }
  0x40   : > { %p1032_p6 = scmp.ne.s32.totalorder %s1513_s3, %s1031_s10  ;;  %p1038_p5 = scmp.lt.u32.totalorder %s1031_s10, %s1513_s3 }
  0x42   : > { %p1034_p10 = pnand %p1032_p6, %p1271_p13 }
  0x44   : > { %p1035_p3 = pneg %p1034_p10 }
  0x46   : > { %p1040_p7 = pnand %p1038_p5, %p1035_p3 }
  0x48   : > { %1043 = shalt.err (!%p1040_p7)
}
  0x49   : > { %s1044_s16 = scalar_lea.vmem %s203_s8, 1024  ;;  %p1052_p1 = scmp.lt.s32.totalorder %s203_s8, %s203_s8 }
  0x4a   : > { %p1045_p9 = scmp.ne.s32.totalorder %s203_s8, %s1044_s16  ;;  %p1053_p2 = scmp.lt.s32.totalorder %s1044_s16, %s1044_s16 }
  0x4c   : > { %p1047_p12 = pnand %p1045_p9, %p1271_p13  ;;  %p1054_p4 = por %p1053_p2, %p1052_p1 }
  0x4e   : > { %p1048_p0 = pneg %p1047_p12 }
  0x50   : > { %p1055_p8 = pnand %p1054_p4, %p1048_p0 }
  0x52   : > { %1058 = shalt.err (!%p1055_p8)
}
  0x53   : > { %895 = dma.hbm_to_vmem [thread:$0]  (!%p1255_p11), %s1513_s3, 1024, %s203_s8, [#allocation9], %s1168_s23, %s1168_s23, %s1169_s27  }
  0x54   : > { %s1344_s14 = sadd.s32 1, %s1163_s21   ;;  %s30_s17 = sadd.s32 1, %s1159_s20 }
  0x55   : > { %s27_s29 = ssub.s32 %s1163_s21, %s1344_s14  ;;  %p37_p8 = scmp.ne.s32.totalorder %s1159_s20, %s1155_s19 }
  0x56   : > { %p28_p4 = scmp.eq.s32.totalorder %s27_s29, 0  ;;  %p38_p13 = scmp.eq.s32.totalorder %s1163_s21, 0 }
  0x57   : > { %p907_p6 = scmp.lt.s32.totalorder %s1163_s21, 2  ;;  %p1524_p3 = scmp.eq.s32.totalorder %s1225_s22, 1 }
  0x58   : > { %s1354_s30 = scalar_select %p28_p4, %s1159_s20, %s30_s17  }
  0x59   : > { %p39_p10 = por %p38_p13, %p37_p8  ;;  %p1358_p5 = por %p1524_p3, %p37_p8 }
  0x5a   : > { %s219_s9 = sand.u32 1, %s1159_s20   ;;  %s745_s10 = sshll.u32 %s1163_s21, 6 }
  0x5b   : > { %s744_s8 = sshll.u32 %s219_s9, 2  ;;  %s1367_s11 = scalar_lea.hbm %s1510_s0, %s745_s10 }
  0x5c   : > { %s223_s12 = scalar_lea.vmem [#allocation2], %s744_s8  ;;  %p1369_p11 = pnand %p907_p6, %p39_p10 }
  0x5d   : > { %s230_s13 = sshll.u32 %s223_s12, 4  ;;  %s220_s16 = scalar_lea.sflag [#allocation3], %s219_s9  ;;  %s1373_s13 = int_to_ptr.vmem [resolvable:$true] %s230_s13 }
  0x5e   : > { %s1059_s6 = scalar_lea.hbm %s1367_s11, 64  ;;  %p1061_p9 = pneg %p1369_p11 }
  0x5f   : > { %p1060_p7 = scmp.ne.s32.totalorder %s1367_s11, %s1059_s6  ;;  %s1064_s17 = scalar_lea.hbm %s1510_s0, 128 }
  0x60   : > { %p1065_p1 = scmp.lt.u32.totalorder %s1367_s11, %s1510_s0  ;;  %p1066_p2 = scmp.lt.u32.totalorder %s1064_s17, %s1059_s6 }
  0x61   : > { %p1062_p12 = pnand %p1061_p9, %p1060_p7  ;;  %p1068_p8 = scmp.lt.u32.totalorder %s1059_s6, %s1367_s11 }
  0x62   : > { %p1067_p4 = por %p1066_p2, %p1065_p1 }
  0x63   : > { %p1063_p0 = pneg %p1062_p12 }
  0x64   : > { %p1069_p13 = por %p1068_p8, %p1067_p4 }
  0x66   : > { %p1070_p6 = pnand %p1069_p13, %p1063_p0 }
  0x68   : > { %1073 = shalt.err (!%p1070_p6)
}
  0x69   : > { %s1074_s9 = scalar_lea.vmem %s1373_s13, 64  ;;  %s1170_s23 = smov [#allocation2]  }
  0x6a   : > { %p1075_p10 = scmp.ne.s32.totalorder %s1373_s13, %s1074_s9  ;;  %s1079_s27 = sshll.u32 %s1170_s23, 4  ;;  %s1080_s27 = int_to_ptr.vmem [resolvable:$false] %s1079_s27 }
  0x6b   : > { %s1081_s12 = scalar_lea.vmem %s1080_s27, 128  ;;  %p1082_p12 = scmp.lt.s32.totalorder %s1373_s13, %s1080_s27 }
  0x6c   : > { %p1077_p3 = pnand %p1075_p10, %p1061_p9  ;;  %p1083_p1 = scmp.lt.s32.totalorder %s1081_s12, %s1074_s9 }
  0x6e   : > { %p1078_p7 = pneg %p1077_p3  ;;  %p1084_p2 = por %p1083_p1, %p1082_p12 }
  0x70   : > { %p1085_p4 = pnand %p1084_p2, %p1078_p7 }
  0x72   : > { %1088 = shalt.err (!%p1085_p4)
}
  0x73   : > { %899 = dma.hbm_to_vmem [thread:$0]  (!%p1369_p11), %s1367_s11, 64, %s1373_s13, %s220_s16  }
  0x74   : > { %p1527_p0 = scmp.ne.s32.totalorder %s1521_s26, 0 }
  0x75   : > { %s1403_s6 = sand.u32 (!%p1527_p0), 1, %s1155_s19   ;;  %p1528_p9 = scmp.ne.s32.totalorder (!%p1527_p0), %s1519_s24, 0 }
  0x76   : > { %239 = sbr.rel (%p1527_p0) target bundleno = 833 (0x341), region = 40  ;;  %s747_s28 = sshll.u32 (!%p1527_p0), %s1403_s6, 2 }
  0x77   : > { %s242_s29 = scalar_lea.sflag (!%p1527_p0), [#allocation3], %s1403_s6  ;;  %s1407_s17 = scalar_lea.vmem (!%p1527_p0), [#allocation2], %s747_s28 }
  0x7d   : > { %1134 = dma.done.wait (%p1528_p9), %s242_s29, 64  }
  0x7e   : > { %1136 = vsyncadd (%p1528_p9), %s242_s29, 4294967232  ;;  %p1529_p11 = scmp.eq.s32.totalorder %s1225_s22, 0 }
  0x80   : > { %1138 = dma.done.wait (%p1529_p11), [#allocation6], 2048   ;;  %p1530_p8 = pmov %p1529_p11 }
  0x82   : > { %1140 = vsyncadd (%p1530_p8), [#allocation6], 4294965248  ;;  %p1531_p13 = pmov %p1530_p8 }
  0x83   : > { %p1532_p6 = pmov %p1530_p8 }
  0x84   : > { %1142 = dma.done.wait (%p1531_p13), [#allocation9], 1024  }
  0x85   : > { %1144 = vsyncadd (%p1532_p6), [#allocation9], 4294966272  ;;  %v1171_v0 = vmov 0.0   ;;  %vm1172_vm0 = vmmov 0   ;;  %v951_v1 = vld [vmem:[#allocation5] sm:$0xff]   ;;  %v952_v2 = vld [vmem:[#allocation5 + $0x8] sm:$0xff]  }
  0x86   : > { %810 = vmatprep.subr.bf16.mxu0 %v1171_v0  ;;  %826 = vmatprep.mubr.msk.bf16.mxu0 %vm1172_vm0, %v1171_v0  ;;  %v953_v3 = vld [vmem:[#allocation5 + $0x10] sm:$0xff]   ;;  %v959_v4 = vld [vmem:[#allocation7] sm:$0xff]   ;;  %v954_v5 = vld [vmem:[#allocation5 + $0x18] sm:$0xff]   ;;  %s751_s15 = sshll.u32 %s1403_s6, 3  ;;  %s780_s8 = sshll.u32 %s1225_s22, 7 }
  0x87   : > { %830 = vmatprep.subr.bf16.mxu1 %v1171_v0  ;;  %846 = vmatprep.mubr.msk.bf16.mxu1 %vm1172_vm0, %v1171_v0  ;;  %v960_v6 = vld [vmem:[#allocation7 + $0x8] sm:$0xff]   ;;  %v955_v7 = vld [vmem:[#allocation5 + $0x20] sm:$0xff]   ;;  %v961_v8 = vld [vmem:[#allocation7 + $0x10] sm:$0xff]   ;;  %s283_s9 = scalar_lea.vmem [#allocation10], %s751_s15  ;;  %s1466_s28 = scalar_lea.hbm %s1515_s5, %s780_s8 }
  0x88   : > { %811 = vmatpush3.bf16.msra.mxu0 %v951_v1  ;;  %831 = vmatpush3.bf16.msra.mxu1 %v959_v4  ;;  %v956_v9 = vld [vmem:[#allocation5 + $0x28] sm:$0xff]   ;;  %v962_v10 = vld [vmem:[#allocation7 + $0x18] sm:$0xff]   ;;  %v957_v11 = vld [vmem:[#allocation5 + $0x30] sm:$0xff]   ;;  %s639_s23 = sshll.u32 %s283_s9, 4  ;;  %s626_s29 = scalar_lea.sflag [#allocation4], %s1403_s6  ;;  %s1468_s23 = int_to_ptr.vmem [resolvable:$true] %s639_s23 }
  0x89   : > { %812 = vmatprep.subr.bf16.mxu0 %v1171_v0  ;;  %832 = vmatprep.subr.bf16.mxu1 %v1171_v0  ;;  %v963_v12 = vld [vmem:[#allocation7 + $0x20] sm:$0xff]   ;;  %v958_v13 = vld [vmem:[#allocation5 + $0x38] sm:$0xff]   ;;  %v964_v14 = vld [vmem:[#allocation7 + $0x28] sm:$0xff]   ;;  %s1089_s22 = scalar_lea.vmem %s1468_s23, 128 }
  0x8a   : > { %v285_v15 = vld [vmem:[%s1407_s17] sm:$0xf]  ;;  %v965_v16 = vld [vmem:[#allocation7 + $0x30] sm:$0xff]   ;;  %v967_v18 = vld [vmem:[#allocation8] sm:$0xff]   ;;  %p1090_p10 = scmp.ne.s32.totalorder %s1468_s23, %s1089_s22  ;;  %s1173_s17 = smov [#allocation10]  }
  0x8b   : > { %v966_v17 = vld [vmem:[#allocation7 + $0x38] sm:$0xff]   ;;  %v968_v19 = vld [vmem:[#allocation8 + $0x8] sm:$0xff]   ;;  %v969_v20 = vld [vmem:[#allocation8 + $0x10] sm:$0xff]   ;;  %s1093_s24 = sshll.u32 %s1173_s17, 4  ;;  %s1094_s24 = int_to_ptr.vmem [resolvable:$false] %s1093_s24 }
  0x8c   : > { %813 = vmatpush3.bf16.msra.mxu0 %v952_v2  ;;  %833 = vmatpush3.bf16.msra.mxu1 %v960_v6  ;;  %v970_v21 = vld [vmem:[#allocation8 + $0x18] sm:$0xff]   ;;  %v971_v22 = vld [vmem:[#allocation8 + $0x20] sm:$0xff]   ;;  %v972_v23 = vld [vmem:[#allocation8 + $0x28] sm:$0xff]   ;;  %p1091_p3 = pnand %p1090_p10, %p1358_p5  ;;  %s1095_s26 = scalar_lea.vmem %s1094_s24, 256 }
  0x8d   : > { %814 = vmatprep.subr.bf16.mxu0 %v1171_v0  ;;  %834 = vmatprep.subr.bf16.mxu1 %v1171_v0  ;;  %v752_v24 = vld [vmem:[%s1514_s4] ss:$0 sm:$0xff]  ;;  %v973_v32 = vld [vmem:[#allocation8 + $0x30] sm:$0xff]   ;;  %v761_v34 = vld [vmem:[%s1514_s4 + $0x1] ss:$0 sm:$0xff]  ;;  %p1096_p12 = scmp.lt.s32.totalorder %s1468_s23, %s1094_s24  ;;  %p1097_p1 = scmp.lt.s32.totalorder %s1095_s26, %s1089_s22 }
  0x8e   : > { %v974_v33 = vld [vmem:[#allocation8 + $0x38] sm:$0xff]   ;;  %p1092_p7 = pneg %p1091_p3 }
  0x8f   : > { %v770_v42 = vld [vmem:[%s1514_s4 + $0x2] ss:$0 sm:$0xff]  ;;  %p1098_p2 = por %p1097_p1, %p1096_p12 }
  0x90   : > { %815 = vmatpush3.bf16.msra.mxu0 %v953_v3  ;;  %835 = vmatpush3.bf16.msra.mxu1 %v961_v8 }
  0x91   : > { %816 = vmatprep.subr.bf16.mxu0 %v1171_v0  ;;  %836 = vmatprep.subr.bf16.mxu1 %v1171_v0  ;;  %p1099_p4 = pnand %p1098_p2, %p1092_p7 }
  0x94   : > { %817 = vmatpush3.bf16.msra.mxu0 %v954_v5  ;;  %837 = vmatpush3.bf16.msra.mxu1 %v962_v10 }
  0x95   : > { %818 = vmatprep.subr.bf16.mxu0 %v1171_v0  ;;  %838 = vmatprep.subr.bf16.mxu1 %v1171_v0 }
  0x98   : > { %819 = vmatpush3.bf16.msra.mxu0 %v955_v7  ;;  %839 = vmatpush3.bf16.msra.mxu1 %v963_v12 }
  0x99   : > { %820 = vmatprep.subr.bf16.mxu0 %v1171_v0  ;;  %840 = vmatprep.subr.bf16.mxu1 %v1171_v0 }
  0x9c   : > { %821 = vmatpush3.bf16.msra.mxu0 %v956_v9  ;;  %841 = vmatpush3.bf16.msra.mxu1 %v964_v14 }
  0x9d   : > { %822 = vmatprep.subr.bf16.mxu0 %v1171_v0  ;;  %842 = vmatprep.subr.bf16.mxu1 %v1171_v0 }
  0xa0   : > { %823 = vmatpush3.bf16.msra.mxu0 %v957_v11  ;;  %843 = vmatpush3.bf16.msra.mxu1 %v965_v16 }
  0xa1   : > { %824 = vmatprep.subr.bf16.mxu0 %v1171_v0  ;;  %844 = vmatprep.subr.bf16.mxu1 %v1171_v0 }
  0xa4   : > { %825 = vmatpush3.bf16.msra.mxu0 %v958_v13  ;;  %845 = vmatpush3.bf16.msra.mxu1 %v966_v17 }
  0xa5   : > { %850 = vmatprep.subr.bf16.mxu0 %v1171_v0 }
  0xa7   : > { %827 = vmatmul.mubr.bf16.vlgmr.msra.gmra.mrb[0].mxu0 %v285_v15 }
  0xa8   : > { %866 = vmatprep.mubr.msk.bf16.mxu0 %vm1172_vm0, %v1171_v0  ;;  %851 = vmatpush3.bf16.msra.mxu0 %v967_v18 }
  0xa9   : > { %852 = vmatprep.subr.bf16.mxu0 %v1171_v0 }
  0xac   : > { %853 = vmatpush3.bf16.msra.mxu0 %v968_v19 }
  0xad   : > { %854 = vmatprep.subr.bf16.mxu0 %v1171_v0 }
  0xb0   : > { %855 = vmatpush3.bf16.msra.mxu0 %v969_v20 }
  0xb1   : > { %856 = vmatprep.subr.bf16.mxu0 %v1171_v0 }
  0xb4   : > { %857 = vmatpush3.bf16.msra.mxu0 %v970_v21 }
  0xb5   : > { %858 = vmatprep.subr.bf16.mxu0 %v1171_v0 }
  0xb8   : > { %859 = vmatpush3.bf16.msra.mxu0 %v971_v22 }
  0xb9   : > { %860 = vmatprep.subr.bf16.mxu0 %v1171_v0 }
  0xbc   : > { %861 = vmatpush3.bf16.msra.mxu0 %v972_v23 }
  0xbd   : > { %862 = vmatprep.subr.bf16.mxu0 %v1171_v0 }
  0xc0   : > { %863 = vmatpush3.bf16.msra.mxu0 %v973_v32 }
  0xc1   : > { %864 = vmatprep.subr.bf16.mxu0 %v1171_v0 }
  0xc4   : > { %865 = vmatpush3.bf16.msra.mxu0 %v974_v33 }
 0x17a   : > { %v391_v25 = vpop.f32.mrb[0].mxu0 }
 0x17b   : > { %v392_v26 = vadd.f32 %v752_v24, %v391_v25  ;;  %v828_v27 = vpop.f32.mrb[1].mxu0 }
 0x17c   : > { %v394_v28 = vpop.f32.mrb[2].mxu0 }
 0x17d   : > { %v397_v29 = vmax.f32 %v392_v26, 0.0  ;;  %v829_v30 = vpop.f32.mrb[3].mxu0 }
 0x17f   : > { %v398_v31 = vpack.c.bf16 %v397_v29, %v397_v29 }
 0x181   : > { %847 = vmatmul.mubr.bf16.vlgmr.msra.gmra.mrb[0].mxu1 %v398_v31 }
 0x254   : > { %v504_v35 = vpop.f32.mrb[0].mxu1 }
 0x255   : > { %v505_v36 = vadd.f32 %v761_v34, %v504_v35  ;;  %v848_v37 = vpop.f32.mrb[1].mxu1 }
 0x256   : > { %v507_v38 = vpop.f32.mrb[2].mxu1 }
 0x257   : > { %v510_v39 = vmax.f32 %v505_v36, 0.0  ;;  %v849_v40 = vpop.f32.mrb[3].mxu1 }
 0x259   : > { %v511_v41 = vpack.c.bf16 %v510_v39, %v510_v39 }
 0x25b   : > { %867 = vmatmul.mubr.bf16.vlgmr.msra.gmra.mrb[4].mxu0 %v511_v41 }
 0x32e   : > { %v617_v43 = vpop.f32.mrb[4].mxu0 }
 0x32f   : > { %v618_v44 = vadd.f32 %v770_v42, %v617_v43  ;;  %v868_v45 = vpop.f32.mrb[5].mxu0 }
 0x330   : > { %v620_v46 = vpop.f32.mrb[6].mxu0 }
 0x331   : > { %v623_v47 = vmax.f32 %v618_v44, 0.0  ;;  %v869_v48 = vpop.f32.mrb[7].mxu0 }
 0x333   : > { %624 = vst [vmem:[%s283_s9] sm:$0xff] %v623_v47 }
 0x334   : > { %1102 = shalt.err (!%p1099_p4)
}
 0x335   : > { %s1103_s6 = scalar_lea.hbm %s1466_s28, 128  ;;  %s1107_s15 = scalar_lea.hbm %s1515_s5, 256 }
 0x336   : > { %p1104_p0 = scmp.ne.s32.totalorder %s1466_s28, %s1103_s6  ;;  %p1108_p8 = scmp.lt.u32.totalorder %s1466_s28, %s1515_s5 }
 0x337   : > { %p1109_p13 = scmp.lt.u32.totalorder %s1107_s15, %s1103_s6  ;;  %p1111_p10 = scmp.lt.u32.totalorder %s1103_s6, %s1466_s28 }
 0x338   : > { %p1105_p9 = pnand %p1104_p0, %p1358_p5 }
 0x339   : > { %p1110_p6 = por %p1109_p13, %p1108_p8 }
 0x33a   : > { %p1106_p11 = pneg %p1105_p9 }
 0x33b   : > { %p1112_p3 = por %p1111_p10, %p1110_p6 }
 0x33d   : > { %p1113_p7 = pnand %p1112_p3, %p1106_p11 }
 0x33f   : > { %1116 = shalt.err (!%p1113_p7)
}
 0x340   : > { %884 = dma.vmem_to_hbm [thread:$0]  (%p1358_p5), %s1468_s23, 128, %s1466_s28, %s626_s29  }
 0x341 PF: > { %s651_s8 = sand.u32 1, %s1151_s18   ;;  %p1533_p12 = scmp.ne.s32.totalorder %s1520_s25, 0 }
 0x342   : > { %p1534_p1 = scmp.ge.s32.totalorder %s1163_s21, 2  ;;  %s652_s9 = scalar_lea.sflag [#allocation4], %s651_s8 }
 0x344   : > { %p901_p2 = pnand %p1534_p1, %p1533_p12 }
 0x346   : > { %1146 = dma.done.wait (!%p901_p2), %s652_s9, 128  }
 0x347   : > { %1148 = vsyncadd (!%p901_p2), %s652_s9, 4294967168  ;;  %p20_p4 = scmp.ge.s32.totalorder %s1344_s14, 4   ;;  %s1535_s18 = smov %s1155_s19 }
 0x348   : > { %s1536_s19 = smov %s1159_s20  ;;  %s1537_s20 = smov %s1354_s30 }
 0x349   : > { %s1538_s21 = smov %s1344_s14  ;;  %22 = sbr.rel (!%p20_p4) target bundleno = 7 (0x7), region = 97 }
 0x350   :  { %657 = vsyncpa [#allocation3], 1 }
 0x351   :  { %659 = vsyncpa [#allocation3 + $0x1], 1 }
 0x352   :  { %660 = vsyncpa [#allocation6], 1 }
 0x353   :  { %661 = vsyncpa [#allocation9], 1 }
 0x354   :  { %662 = vsyncpa [#allocation4], 1 }
 0x355   :  { %664 = vsyncpa [#allocation4 + $0x1], 1 }

// kernel: tpu_custom_call.1
= control target key start
LH: loop header
LB: loop body
LE: loop exit
PB: predicated region body
PF: predicated region fallthrough
CT: control target
= control target key end

     0   :  { %10 = vsyncpa [#allocation3], 0  ;;  %s1510_s0 = inlined_call_operand.hbm [shape: bf16[16,128], index: 0, kind: input, shape index: {}]   ;;  %s1511_s1 = inlined_call_operand.hbm [shape: bf16[128,128], index: 1, kind: input, shape index: {}]   ;;  %s1512_s2 = inlined_call_operand.hbm [shape: bf16[128,128], index: 2, kind: input, shape index: {}]   ;;  %s1513_s3 = inlined_call_operand.hbm [shape: bf16[128,128], index: 3, kind: input, shape index: {}]   ;;  %s1514_s4 = inlined_call_operand.vmem [shape: f32[1,384], index: 4, kind: input, shape index: {}]   ;;  %s1515_s5 = inlined_call_operand.hbm [shape: f32[16,128], index: 5, kind: output, shape index: {}]  }
   0x1   :  { %12 = vsyncpa [#allocation3 + $0x1], 0 }
   0x2   :  { %13 = vsyncpa [#allocation6], 0 }
   0x3   :  { %14 = vsyncpa [#allocation9], 0 }
   0x4   :  { %15 = vsyncpa [#allocation4], 0 }
   0x5   :  { %17 = vsyncpa [#allocation4 + $0x1], 0  ;;  %s1204_s18 = smov 0   ;;  %s1206_s19 = smov 0  }
   0x6   :  { %s1208_s20 = smov 0   ;;  %s1210_s21 = smov 0  }
   0x7 LB: > { %s1225_s22 = sadd.s32 4294967295, %s1163_s21   ;;  %s738_s23 = sadd.s32 4294967294, %s1163_s21   ;;  %s1163_s21 = sphi %s1210_s21, %s1538_s21   ;;  %s1159_s20 = sphi %s1208_s20, %s1537_s20   ;;  %s1155_s19 = sphi %s1206_s19, %s1536_s19   ;;  %s1151_s18 = sphi %s1204_s18, %s1535_s18  }
   0x8   : > { %p43_p0 = scmp.ne.s32.totalorder %s1155_s19, %s1151_s18  ;;  %p1516_p1 = scmp.eq.s32.totalorder %s1225_s22, 0 }
   0x9   : > { %p157_p3 = scmp.eq.s32.totalorder %s738_s23, 1  ;;  %p739_p5 = scmp.ge.s32.totalorder %s1163_s21, 1 }
   0xa   : > { %p1234_p4 = por %p1516_p1, %p43_p0  ;;  %p164_p7 = scmp.lt.s32.totalorder %s1163_s21, 3 }
   0xb   : > { %p1239_p6 = por %p157_p3, %p43_p0  ;;  %s1165_s27 = smov [#allocation5]  }
   0xc   : > { %s1519_s24 = scalar_select %p1234_p4, 1, 0 }
   0xd   : > { %s1520_s25 = scalar_select %p1239_p6, 1, 0 }
   0xe   : > { %p1244_p8 = pnand %p739_p5, %p164_p7  ;;  %s176_s28 = sshll.u32 %s1165_s27, 4  ;;  %s1248_s28 = int_to_ptr.vmem [resolvable:$true] %s176_s28 }
   0xf   : > { %s1166_s30 = smov [#allocation7]   ;;  %s1167_s7 = smov [#allocation8]  }
  0x10   : > { %s1521_s26 = scalar_select %p1244_p8, 1, 0 }
  0x11   : > { %p886_p9 = pneg %p1244_p8  ;;  %s189_s6 = sshll.u32 %s1166_s30, 4  ;;  %s1259_s6 = int_to_ptr.vmem [resolvable:$true] %s189_s6 }
  0x12   : > { %s1261_s8 = sshll.u32 %s1167_s7, 4  ;;  %s975_s11 = scalar_lea.hbm %s1511_s1, 1024  ;;  %s203_s8 = int_to_ptr.vmem [resolvable:$true] %s1261_s8 }
  0x13   : > { %p1255_p11 = pnand %p886_p9, %p1516_p1  ;;  %p976_p12 = scmp.ne.s32.totalorder %s1511_s1, %s975_s11 }
  0x14   : > { %p982_p5 = scmp.lt.u32.totalorder %s975_s11, %s1511_s1 }
  0x15   : > { %p1271_p13 = pneg %p1255_p11 }
  0x17   : > { %p978_p0 = pnand %p1271_p13, %p976_p12 }
  0x19   : > { %p979_p3 = pneg %p978_p0 }
  0x1b   : > { %p984_p7 = pnand %p982_p5, %p979_p3 }
  0x1d   : > { %987 = shalt.err (!%p984_p7)
}
  0x1e   : > { %s988_s17 = scalar_lea.vmem %s1248_s28, 1024  ;;  %p996_p2 = scmp.lt.s32.totalorder %s1248_s28, %s1248_s28 }
  0x1f   : > { %p989_p9 = scmp.ne.s32.totalorder %s1248_s28, %s988_s17  ;;  %p997_p6 = scmp.lt.s32.totalorder %s988_s17, %s988_s17 }
  0x21   : > { %p991_p10 = pnand %p989_p9, %p1271_p13  ;;  %p998_p12 = por %p997_p6, %p996_p2 }
  0x23   : > { %p992_p1 = pneg %p991_p10 }
  0x25   : > { %p999_p0 = pnand %p998_p12, %p992_p1 }
  0x27   : > { %1002 = shalt.err (!%p999_p0)
}
  0x28   : > { %s1168_s23 = smov 64   ;;  %s1169_s27 = smov 4  }
  0x29   : > { %889 = dma.hbm_to_vmem [thread:$0]  (!%p1255_p11), %s1511_s1, 1024, %s1248_s28, [#allocation6], %s1168_s23, %s1168_s23, %s1169_s27  }
  0x2a   : > { %s1003_s11 = scalar_lea.hbm %s1512_s2, 1024 }
  0x2b   : > { %p1004_p1 = scmp.ne.s32.totalorder %s1512_s2, %s1003_s11  ;;  %p1010_p10 = scmp.lt.u32.totalorder %s1003_s11, %s1512_s2 }
  0x2d   : > { %p1006_p2 = pnand %p1004_p1, %p1271_p13 }
  0x2f   : > { %p1007_p6 = pneg %p1006_p2 }
  0x31   : > { %p1012_p3 = pnand %p1010_p10, %p1007_p6 }
  0x33   : > { %1015 = shalt.err (!%p1012_p3)
}
  0x34   : > { %s1016_s28 = scalar_lea.vmem %s1259_s6, 1024  ;;  %p1024_p12 = scmp.lt.s32.totalorder %s1259_s6, %s1259_s6 }
  0x35   : > { %p1017_p5 = scmp.ne.s32.totalorder %s1259_s6, %s1016_s28  ;;  %p1025_p0 = scmp.lt.s32.totalorder %s1016_s28, %s1016_s28 }
  0x37   : > { %p1019_p7 = pnand %p1017_p5, %p1271_p13  ;;  %p1026_p1 = por %p1025_p0, %p1024_p12 }
  0x39   : > { %p1020_p9 = pneg %p1019_p7 }
  0x3b   : > { %p1027_p2 = pnand %p1026_p1, %p1020_p9 }
  0x3d   : > { %1030 = shalt.err (!%p1027_p2)
}
  0x3e   : > { %892 = dma.hbm_to_vmem [thread:$0]  (!%p1255_p11), %s1512_s2, 1024, %s1259_s6, [#allocation6], %s1168_s23, %s1168_s23, %s1169_s27  }
  0x3f   : > { %s1031_s10 = scalar_lea.hbm %s1513_s3, 1024 }
  0x40   : > { %p1032_p6 = scmp.ne.s32.totalorder %s1513_s3, %s1031_s10  ;;  %p1038_p5 = scmp.lt.u32.totalorder %s1031_s10, %s1513_s3 }
  0x42   : > { %p1034_p10 = pnand %p1032_p6, %p1271_p13 }
  0x44   : > { %p1035_p3 = pneg %p1034_p10 }
  0x46   : > { %p1040_p7 = pnand %p1038_p5, %p1035_p3 }
  0x48   : > { %1043 = shalt.err (!%p1040_p7)
}
  0x49   : > { %s1044_s16 = scalar_lea.vmem %s203_s8, 1024  ;;  %p1052_p1 = scmp.lt.s32.totalorder %s203_s8, %s203_s8 }
  0x4a   : > { %p1045_p9 = scmp.ne.s32.totalorder %s203_s8, %s1044_s16  ;;  %p1053_p2 = scmp.lt.s32.totalorder %s1044_s16, %s1044_s16 }
  0x4c   : > { %p1047_p12 = pnand %p1045_p9, %p1271_p13  ;;  %p1054_p4 = por %p1053_p2, %p1052_p1 }
  0x4e   : > { %p1048_p0 = pneg %p1047_p12 }
  0x50   : > { %p1055_p8 = pnand %p1054_p4, %p1048_p0 }
  0x52   : > { %1058 = shalt.err (!%p1055_p8)
}
  0x53   : > { %895 = dma.hbm_to_vmem [thread:$0]  (!%p1255_p11), %s1513_s3, 1024, %s203_s8, [#allocation9], %s1168_s23, %s1168_s23, %s1169_s27  }
  0x54   : > { %s1344_s14 = sadd.s32 1, %s1163_s21   ;;  %s30_s17 = sadd.s32 1, %s1159_s20 }
  0x55   : > { %s27_s29 = ssub.s32 %s1163_s21, %s1344_s14  ;;  %p37_p8 = scmp.ne.s32.totalorder %s1159_s20, %s1155_s19 }
  0x56   : > { %p28_p4 = scmp.eq.s32.totalorder %s27_s29, 0  ;;  %p38_p13 = scmp.eq.s32.totalorder %s1163_s21, 0 }
  0x57   : > { %p907_p6 = scmp.lt.s32.totalorder %s1163_s21, 2  ;;  %p1524_p3 = scmp.eq.s32.totalorder %s1225_s22, 1 }
  0x58   : > { %s1354_s30 = scalar_select %p28_p4, %s1159_s20, %s30_s17  }
  0x59   : > { %p39_p10 = por %p38_p13, %p37_p8  ;;  %p1358_p5 = por %p1524_p3, %p37_p8 }
  0x5a   : > { %s219_s9 = sand.u32 1, %s1159_s20   ;;  %s745_s10 = sshll.u32 %s1163_s21, 6 }
  0x5b   : > { %s744_s8 = sshll.u32 %s219_s9, 2  ;;  %s1367_s11 = scalar_lea.hbm %s1510_s0, %s745_s10 }
  0x5c   : > { %s223_s12 = scalar_lea.vmem [#allocation2], %s744_s8  ;;  %p1369_p11 = pnand %p907_p6, %p39_p10 }
  0x5d   : > { %s230_s13 = sshll.u32 %s223_s12, 4  ;;  %s220_s16 = scalar_lea.sflag [#allocation3], %s219_s9  ;;  %s1373_s13 = int_to_ptr.vmem [resolvable:$true] %s230_s13 }
  0x5e   : > { %s1059_s6 = scalar_lea.hbm %s1367_s11, 64  ;;  %p1061_p9 = pneg %p1369_p11 }
  0x5f   : > { %p1060_p7 = scmp.ne.s32.totalorder %s1367_s11, %s1059_s6  ;;  %s1064_s17 = scalar_lea.hbm %s1510_s0, 128 }
  0x60   : > { %p1065_p1 = scmp.lt.u32.totalorder %s1367_s11, %s1510_s0  ;;  %p1066_p2 = scmp.lt.u32.totalorder %s1064_s17, %s1059_s6 }
  0x61   : > { %p1062_p12 = pnand %p1061_p9, %p1060_p7  ;;  %p1068_p8 = scmp.lt.u32.totalorder %s1059_s6, %s1367_s11 }
  0x62   : > { %p1067_p4 = por %p1066_p2, %p1065_p1 }
  0x63   : > { %p1063_p0 = pneg %p1062_p12 }
  0x64   : > { %p1069_p13 = por %p1068_p8, %p1067_p4 }
  0x66   : > { %p1070_p6 = pnand %p1069_p13, %p1063_p0 }
  0x68   : > { %1073 = shalt.err (!%p1070_p6)
}
  0x69   : > { %s1074_s9 = scalar_lea.vmem %s1373_s13, 64  ;;  %s1170_s23 = smov [#allocation2]  }
  0x6a   : > { %p1075_p10 = scmp.ne.s32.totalorder %s1373_s13, %s1074_s9  ;;  %s1079_s27 = sshll.u32 %s1170_s23, 4  ;;  %s1080_s27 = int_to_ptr.vmem [resolvable:$false] %s1079_s27 }
  0x6b   : > { %s1081_s12 = scalar_lea.vmem %s1080_s27, 128  ;;  %p1082_p12 = scmp.lt.s32.totalorder %s1373_s13, %s1080_s27 }
  0x6c   : > { %p1077_p3 = pnand %p1075_p10, %p1061_p9  ;;  %p1083_p1 = scmp.lt.s32.totalorder %s1081_s12, %s1074_s9 }
  0x6e   : > { %p1078_p7 = pneg %p1077_p3  ;;  %p1084_p2 = por %p1083_p1, %p1082_p12 }
  0x70   : > { %p1085_p4 = pnand %p1084_p2, %p1078_p7 }
  0x72   : > { %1088 = shalt.err (!%p1085_p4)
}
  0x73   : > { %899 = dma.hbm_to_vmem [thread:$0]  (!%p1369_p11), %s1367_s11, 64, %s1373_s13, %s220_s16  }
  0x74   : > { %p1527_p0 = scmp.ne.s32.totalorder %s1521_s26, 0 }
  0x75   : > { %s1403_s6 = sand.u32 (!%p1527_p0), 1, %s1155_s19   ;;  %p1528_p9 = scmp.ne.s32.totalorder (!%p1527_p0), %s1519_s24, 0 }
  0x76   : > { %239 = sbr.rel (%p1527_p0) target bundleno = 833 (0x341), region = 40  ;;  %s747_s28 = sshll.u32 (!%p1527_p0), %s1403_s6, 2 }
  0x77   : > { %s242_s29 = scalar_lea.sflag (!%p1527_p0), [#allocation3], %s1403_s6  ;;  %s1407_s17 = scalar_lea.vmem (!%p1527_p0), [#allocation2], %s747_s28 }
  0x7d   : > { %1134 = dma.done.wait (%p1528_p9), %s242_s29, 64  }
  0x7e   : > { %1136 = vsyncadd (%p1528_p9), %s242_s29, 4294967232  ;;  %p1529_p11 = scmp.eq.s32.totalorder %s1225_s22, 0 }
  0x80   : > { %1138 = dma.done.wait (%p1529_p11), [#allocation6], 2048   ;;  %p1530_p8 = pmov %p1529_p11 }
  0x82   : > { %1140 = vsyncadd (%p1530_p8), [#allocation6], 4294965248  ;;  %p1531_p13 = pmov %p1530_p8 }
  0x83   : > { %p1532_p6 = pmov %p1530_p8 }
  0x84   : > { %1142 = dma.done.wait (%p1531_p13), [#allocation9], 1024  }
  0x85   : > { %1144 = vsyncadd (%p1532_p6), [#allocation9], 4294966272  ;;  %v1171_v0 = vmov 0.0   ;;  %vm1172_vm0 = vmmov 0   ;;  %v951_v1 = vld [vmem:[#allocation5] sm:$0xff]   ;;  %v952_v2 = vld [vmem:[#allocation5 + $0x8] sm:$0xff]  }
  0x86   : > { %810 = vmatprep.subr.bf16.mxu0 %v1171_v0  ;;  %826 = vmatprep.mubr.msk.bf16.mxu0 %vm1172_vm0, %v1171_v0  ;;  %v953_v3 = vld [vmem:[#allocation5 + $0x10] sm:$0xff]   ;;  %v959_v4 = vld [vmem:[#allocation7] sm:$0xff]   ;;  %v954_v5 = vld [vmem:[#allocation5 + $0x18] sm:$0xff]   ;;  %s751_s15 = sshll.u32 %s1403_s6, 3  ;;  %s780_s8 = sshll.u32 %s1225_s22, 7 }
  0x87   : > { %830 = vmatprep.subr.bf16.mxu1 %v1171_v0  ;;  %846 = vmatprep.mubr.msk.bf16.mxu1 %vm1172_vm0, %v1171_v0  ;;  %v960_v6 = vld [vmem:[#allocation7 + $0x8] sm:$0xff]   ;;  %v955_v7 = vld [vmem:[#allocation5 + $0x20] sm:$0xff]   ;;  %v961_v8 = vld [vmem:[#allocation7 + $0x10] sm:$0xff]   ;;  %s283_s9 = scalar_lea.vmem [#allocation10], %s751_s15  ;;  %s1466_s28 = scalar_lea.hbm %s1515_s5, %s780_s8 }
  0x88   : > { %811 = vmatpush3.bf16.msra.mxu0 %v951_v1  ;;  %831 = vmatpush3.bf16.msra.mxu1 %v959_v4  ;;  %v956_v9 = vld [vmem:[#allocation5 + $0x28] sm:$0xff]   ;;  %v962_v10 = vld [vmem:[#allocation7 + $0x18] sm:$0xff]   ;;  %v957_v11 = vld [vmem:[#allocation5 + $0x30] sm:$0xff]   ;;  %s639_s23 = sshll.u32 %s283_s9, 4  ;;  %s626_s29 = scalar_lea.sflag [#allocation4], %s1403_s6  ;;  %s1468_s23 = int_to_ptr.vmem [resolvable:$true] %s639_s23 }
  0x89   : > { %812 = vmatprep.subr.bf16.mxu0 %v1171_v0  ;;  %832 = vmatprep.subr.bf16.mxu1 %v1171_v0  ;;  %v963_v12 = vld [vmem:[#allocation7 + $0x20] sm:$0xff]   ;;  %v958_v13 = vld [vmem:[#allocation5 + $0x38] sm:$0xff]   ;;  %v964_v14 = vld [vmem:[#allocation7 + $0x28] sm:$0xff]   ;;  %s1089_s22 = scalar_lea.vmem %s1468_s23, 128 }
  0x8a   : > { %v285_v15 = vld [vmem:[%s1407_s17] sm:$0xf]  ;;  %v965_v16 = vld [vmem:[#allocation7 + $0x30] sm:$0xff]   ;;  %v967_v18 = vld [vmem:[#allocation8] sm:$0xff]   ;;  %p1090_p10 = scmp.ne.s32.totalorder %s1468_s23, %s1089_s22  ;;  %s1173_s17 = smov [#allocation10]  }
  0x8b   : > { %v966_v17 = vld [vmem:[#allocation7 + $0x38] sm:$0xff]   ;;  %v968_v19 = vld [vmem:[#allocation8 + $0x8] sm:$0xff]   ;;  %v969_v20 = vld [vmem:[#allocation8 + $0x10] sm:$0xff]   ;;  %s1093_s24 = sshll.u32 %s1173_s17, 4  ;;  %s1094_s24 = int_to_ptr.vmem [resolvable:$false] %s1093_s24 }
  0x8c   : > { %813 = vmatpush3.bf16.msra.mxu0 %v952_v2  ;;  %833 = vmatpush3.bf16.msra.mxu1 %v960_v6  ;;  %v970_v21 = vld [vmem:[#allocation8 + $0x18] sm:$0xff]   ;;  %v971_v22 = vld [vmem:[#allocation8 + $0x20] sm:$0xff]   ;;  %v972_v23 = vld [vmem:[#allocation8 + $0x28] sm:$0xff]   ;;  %p1091_p3 = pnand %p1090_p10, %p1358_p5  ;;  %s1095_s26 = scalar_lea.vmem %s1094_s24, 256 }
  0x8d   : > { %814 = vmatprep.subr.bf16.mxu0 %v1171_v0  ;;  %834 = vmatprep.subr.bf16.mxu1 %v1171_v0  ;;  %v752_v24 = vld [vmem:[%s1514_s4] ss:$0 sm:$0xff]  ;;  %v973_v32 = vld [vmem:[#allocation8 + $0x30] sm:$0xff]   ;;  %v761_v34 = vld [vmem:[%s1514_s4 + $0x1] ss:$0 sm:$0xff]  ;;  %p1096_p12 = scmp.lt.s32.totalorder %s1468_s23, %s1094_s24  ;;  %p1097_p1 = scmp.lt.s32.totalorder %s1095_s26, %s1089_s22 }
  0x8e   : > { %v974_v33 = vld [vmem:[#allocation8 + $0x38] sm:$0xff]   ;;  %p1092_p7 = pneg %p1091_p3 }
  0x8f   : > { %v770_v42 = vld [vmem:[%s1514_s4 + $0x2] ss:$0 sm:$0xff]  ;;  %p1098_p2 = por %p1097_p1, %p1096_p12 }
  0x90   : > { %815 = vmatpush3.bf16.msra.mxu0 %v953_v3  ;;  %835 = vmatpush3.bf16.msra.mxu1 %v961_v8 }
  0x91   : > { %816 = vmatprep.subr.bf16.mxu0 %v1171_v0  ;;  %836 = vmatprep.subr.bf16.mxu1 %v1171_v0  ;;  %p1099_p4 = pnand %p1098_p2, %p1092_p7 }
  0x94   : > { %817 = vmatpush3.bf16.msra.mxu0 %v954_v5  ;;  %837 = vmatpush3.bf16.msra.mxu1 %v962_v10 }
  0x95   : > { %818 = vmatprep.subr.bf16.mxu0 %v1171_v0  ;;  %838 = vmatprep.subr.bf16.mxu1 %v1171_v0 }
  0x98   : > { %819 = vmatpush3.bf16.msra.mxu0 %v955_v7  ;;  %839 = vmatpush3.bf16.msra.mxu1 %v963_v12 }
  0x99   : > { %820 = vmatprep.subr.bf16.mxu0 %v1171_v0  ;;  %840 = vmatprep.subr.bf16.mxu1 %v1171_v0 }
  0x9c   : > { %821 = vmatpush3.bf16.msra.mxu0 %v956_v9  ;;  %841 = vmatpush3.bf16.msra.mxu1 %v964_v14 }
  0x9d   : > { %822 = vmatprep.subr.bf16.mxu0 %v1171_v0  ;;  %842 = vmatprep.subr.bf16.mxu1 %v1171_v0 }
  0xa0   : > { %823 = vmatpush3.bf16.msra.mxu0 %v957_v11  ;;  %843 = vmatpush3.bf16.msra.mxu1 %v965_v16 }
  0xa1   : > { %824 = vmatprep.subr.bf16.mxu0 %v1171_v0  ;;  %844 = vmatprep.subr.bf16.mxu1 %v1171_v0 }
  0xa4   : > { %825 = vmatpush3.bf16.msra.mxu0 %v958_v13  ;;  %845 = vmatpush3.bf16.msra.mxu1 %v966_v17 }
  0xa5   : > { %850 = vmatprep.subr.bf16.mxu0 %v1171_v0 }
  0xa7   : > { %827 = vmatmul.mubr.bf16.vlgmr.msra.gmra.mrb[0].mxu0 %v285_v15 }
  0xa8   : > { %866 = vmatprep.mubr.msk.bf16.mxu0 %vm1172_vm0, %v1171_v0  ;;  %851 = vmatpush3.bf16.msra.mxu0 %v967_v18 }
  0xa9   : > { %852 = vmatprep.subr.bf16.mxu0 %v1171_v0 }
  0xac   : > { %853 = vmatpush3.bf16.msra.mxu0 %v968_v19 }
  0xad   : > { %854 = vmatprep.subr.bf16.mxu0 %v1171_v0 }
  0xb0   : > { %855 = vmatpush3.bf16.msra.mxu0 %v969_v20 }
  0xb1   : > { %856 = vmatprep.subr.bf16.mxu0 %v1171_v0 }
  0xb4   : > { %857 = vmatpush3.bf16.msra.mxu0 %v970_v21 }
  0xb5   : > { %858 = vmatprep.subr.bf16.mxu0 %v1171_v0 }
  0xb8   : > { %859 = vmatpush3.bf16.msra.mxu0 %v971_v22 }
  0xb9   : > { %860 = vmatprep.subr.bf16.mxu0 %v1171_v0 }
  0xbc   : > { %861 = vmatpush3.bf16.msra.mxu0 %v972_v23 }
  0xbd   : > { %862 = vmatprep.subr.bf16.mxu0 %v1171_v0 }
  0xc0   : > { %863 = vmatpush3.bf16.msra.mxu0 %v973_v32 }
  0xc1   : > { %864 = vmatprep.subr.bf16.mxu0 %v1171_v0 }
  0xc4   : > { %865 = vmatpush3.bf16.msra.mxu0 %v974_v33 }
 0x17a   : > { %v391_v25 = vpop.f32.mrb[0].mxu0 }
 0x17b   : > { %v392_v26 = vadd.f32 %v752_v24, %v391_v25  ;;  %v828_v27 = vpop.f32.mrb[1].mxu0 }
 0x17c   : > { %v394_v28 = vpop.f32.mrb[2].mxu0 }
 0x17d   : > { %v397_v29 = vmax.f32 %v392_v26, 0.0  ;;  %v829_v30 = vpop.f32.mrb[3].mxu0 }
 0x17f   : > { %v398_v31 = vpack.c.bf16 %v397_v29, %v397_v29 }
 0x181   : > { %847 = vmatmul.mubr.bf16.vlgmr.msra.gmra.mrb[0].mxu1 %v398_v31 }
 0x254   : > { %v504_v35 = vpop.f32.mrb[0].mxu1 }
 0x255   : > { %v505_v36 = vadd.f32 %v761_v34, %v504_v35  ;;  %v848_v37 = vpop.f32.mrb[1].mxu1 }
 0x256   : > { %v507_v38 = vpop.f32.mrb[2].mxu1 }
 0x257   : > { %v510_v39 = vmax.f32 %v505_v36, 0.0  ;;  %v849_v40 = vpop.f32.mrb[3].mxu1 }
 0x259   : > { %v511_v41 = vpack.c.bf16 %v510_v39, %v510_v39 }
 0x25b   : > { %867 = vmatmul.mubr.bf16.vlgmr.msra.gmra.mrb[4].mxu0 %v511_v41 }
 0x32e   : > { %v617_v43 = vpop.f32.mrb[4].mxu0 }
 0x32f   : > { %v618_v44 = vadd.f32 %v770_v42, %v617_v43  ;;  %v868_v45 = vpop.f32.mrb[5].mxu0 }
 0x330   : > { %v620_v46 = vpop.f32.mrb[6].mxu0 }
 0x331   : > { %v623_v47 = vmax.f32 %v618_v44, 0.0  ;;  %v869_v48 = vpop.f32.mrb[7].mxu0 }
 0x333   : > { %624 = vst [vmem:[%s283_s9] sm:$0xff] %v623_v47 }
 0x334   : > { %1102 = shalt.err (!%p1099_p4)
}
 0x335   : > { %s1103_s6 = scalar_lea.hbm %s1466_s28, 128  ;;  %s1107_s15 = scalar_lea.hbm %s1515_s5, 256 }
 0x336   : > { %p1104_p0 = scmp.ne.s32.totalorder %s1466_s28, %s1103_s6  ;;  %p1108_p8 = scmp.lt.u32.totalorder %s1466_s28, %s1515_s5 }
 0x337   : > { %p1109_p13 = scmp.lt.u32.totalorder %s1107_s15, %s1103_s6  ;;  %p1111_p10 = scmp.lt.u32.totalorder %s1103_s6, %s1466_s28 }
 0x338   : > { %p1105_p9 = pnand %p1104_p0, %p1358_p5 }
 0x339   : > { %p1110_p6 = por %p1109_p13, %p1108_p8 }
 0x33a   : > { %p1106_p11 = pneg %p1105_p9 }
 0x33b   : > { %p1112_p3 = por %p1111_p10, %p1110_p6 }
 0x33d   : > { %p1113_p7 = pnand %p1112_p3, %p1106_p11 }
 0x33f   : > { %1116 = shalt.err (!%p1113_p7)
}
 0x340   : > { %884 = dma.vmem_to_hbm [thread:$0]  (%p1358_p5), %s1468_s23, 128, %s1466_s28, %s626_s29  }
 0x341 PF: > { %s651_s8 = sand.u32 1, %s1151_s18   ;;  %p1533_p12 = scmp.ne.s32.totalorder %s1520_s25, 0 }
 0x342   : > { %p1534_p1 = scmp.ge.s32.totalorder %s1163_s21, 2  ;;  %s652_s9 = scalar_lea.sflag [#allocation4], %s651_s8 }
 0x344   : > { %p901_p2 = pnand %p1534_p1, %p1533_p12 }
 0x346   : > { %1146 = dma.done.wait (!%p901_p2), %s652_s9, 128  }
 0x347   : > { %1148 = vsyncadd (!%p901_p2), %s652_s9, 4294967168  ;;  %p20_p4 = scmp.ge.s32.totalorder %s1344_s14, 4   ;;  %s1535_s18 = smov %s1155_s19 }
 0x348   : > { %s1536_s19 = smov %s1159_s20  ;;  %s1537_s20 = smov %s1354_s30 }
 0x349   : > { %s1538_s21 = smov %s1344_s14  ;;  %22 = sbr.rel (!%p20_p4) target bundleno = 7 (0x7), region = 97 }
 0x350   :  { %657 = vsyncpa [#allocation3], 1 }
 0x351   :  { %659 = vsyncpa [#allocation3 + $0x1], 1 }
 0x352   :  { %660 = vsyncpa [#allocation6], 1 }
 0x353   :  { %661 = vsyncpa [#allocation9], 1 }
 0x354   :  { %662 = vsyncpa [#allocation4], 1 }
 0x355   :  { %664 = vsyncpa [#allocation4 + $0x1], 1 }

</bundles_post_ra>
